<compile_context>
chip_gen: v7x
topology: tpu7x:2x2x1
jax: 0.10.0
libtpu: 0.0.40
codegen_flags: <defaults>
</compile_context>

<pallas_src>
import math

import jax
import jax.numpy as jnp
from jax import lax
from jax.experimental import pallas as pl
from jax.experimental.pallas import tpu as pltpu

_INV_SQRT2 = 1.0 / math.sqrt(2.0)


def _gelu_bert_kernel(x_ref, o_ref):
    xf = x_ref[...].astype(jnp.float32)
    # == 0.5 * x * (1 + erf(x/sqrt(2))), factored to save one VALU multiply.
    # TODO(synk): if the bundle shows VALU saturation from erf's polynomial on
    # v7x / bf16-on-v6e, evaluate part of the polynomial in bf16 (bf16 VALU) and
    # push exp terms onto the EUP slot instead of tuning DMA further.
    o_ref[...] = (xf * (0.5 + 0.5 * lax.erf(xf * _INV_SQRT2))).astype(o_ref.dtype)


def _round_up(v, m):
    return ((v + m - 1) // m) * m


def _chip_config():
    """Return (block_bytes, multi_tc) per TPU generation; conservative fallback."""
    block_bytes = 3 * 1024 * 1024      # 4x = 12 MiB, under v5e's 16 MiB scoped VMEM
    multi_tc = False
    try:
        kind = jax.devices()[0].device_kind.lower()
    except Exception:
        return block_bytes, multi_tc
    if "v7" in kind:
        block_bytes = 6 * 1024 * 1024  # 4x = 24 MiB, under the 32 MiB scoped default
        multi_tc = True                # 2 TensorCores per chip
    elif "v6" in kind:
        block_bytes = 6 * 1024 * 1024  # 1 TC, but 128 MiB physical / 32 MiB scoped
    return block_bytes, multi_tc


def _pick_tile_rows(rows, lane, itemsize, block_bytes, multi_tc):
    """Rows per block: dtype-aware sublane rounding, generation-aware splitting."""
    sub = max(8, 32 // itemsize)   # native sublane packing: 8 f32, 16 bf16, 32 int8
    target_rows = max(sub, (block_bytes // (lane * itemsize)) // sub * sub)

    if rows < 2 * sub or (not multi_tc and rows <= target_rows):
        # One block covering the full array (full-extent blocks are always legal).
        return rows

    steps = pl.cdiv(rows, target_rows)
    if multi_tc:
        steps = max(2, steps)
        if steps % 2:
            steps += 1             # balanced megacore sharding: even step count
    tile_rows = _round_up(pl.cdiv(rows, steps), sub)
    return min(tile_rows, rows)


def _gelu_pallas_2d(x2d, tile_rows, donate):
    """Run the GeLU kernel over a lane-dense (rows, lane) slab, tiled along rows."""
    rows, lane = x2d.shape
    itemsize = jnp.dtype(x2d.dtype).itemsize
    grid = (pl.cdiv(rows, tile_rows),)
    extra = {"input_output_aliases": {0: 0}} if donate else {}
    return pl.pallas_call(
        _gelu_bert_kernel,
        out_shape=jax.ShapeDtypeStruct((rows, lane), x2d.dtype),
        grid=grid,
        in_specs=[pl.BlockSpec((tile_rows, lane), lambda i: (i, 0))],
        out_specs=pl.BlockSpec((tile_rows, lane), lambda i: (i, 0)),
        compiler_params=pltpu.CompilerParams(
            dimension_semantics=("parallel",)),
        cost_estimate=pl.CostEstimate(
            flops=4 * rows * lane,
            transcendentals=rows * lane,
            bytes_accessed=2 * rows * lane * itemsize),
        **extra,
    )(x2d)


def gelu_bert(x, *, block_bytes=None, donate_input=False):
    """Exact BERT GeLU (0.5*x*(1+erf(x/sqrt(2)))) via a Pallas TPU kernel.

    donate_input=True aliases the output onto x's HBM buffer; only use it when the
    caller does not read x afterwards (otherwise XLA adds a defensive copy).
    """
    orig_shape = x.shape
    dtype = x.dtype
    n = x.size
    if n == 0:
        return x

    auto_bytes, multi_tc = _chip_config()
    if block_bytes is None:
        block_bytes = auto_bytes
    itemsize = jnp.dtype(dtype).itemsize

    # Widest lane dim (multiple of 128) that divides n -> unmasked full-lane stores,
    # no pad / copy on the common path.
    lane = None
    for cand in (1024, 512, 256, 128):
        if n % cand == 0:
            lane = cand
            break

    if lane is not None:
        rows = n // lane
        x2d = jnp.reshape(x, (rows, lane))
        tile_rows = _pick_tile_rows(rows, lane, itemsize, block_bytes, multi_tc)
        out2d = _gelu_pallas_2d(x2d, tile_rows, donate_input)
        return jnp.reshape(out2d, orig_shape)

    # Ragged fallback: kernel on the 128-aligned prefix; the <=127-element tail is
    # computed directly (no full-array jnp.pad + trailing slice round-trips).
    lane = 128
    x_flat = jnp.reshape(x, (n,))
    n_main = (n // lane) * lane
    tail = x_flat[n_main:].astype(jnp.float32)
    tail_out = (tail * (0.5 + 0.5 * lax.erf(tail * _INV_SQRT2))).astype(dtype)
    if n_main == 0:
        return jnp.reshape(tail_out, orig_shape)
    rows = n_main // lane
    x2d = jnp.reshape(x_flat[:n_main], (rows, lane))
    tile_rows = _pick_tile_rows(rows, lane, itemsize, block_bytes, multi_tc)
    out2d = _gelu_pallas_2d(x2d, tile_rows, donate=False)
    out_flat = jnp.concatenate([jnp.reshape(out2d, (n_main,)), tail_out])
    return jnp.reshape(out_flat, orig_shape)


def _gelu_bert_ref(x):
    xf = x.astype(jnp.float32)
    return (0.5 * xf * (1.0 + lax.erf(xf * _INV_SQRT2))).astype(x.dtype)


if __name__ == "__main__":
    key = jax.random.PRNGKey(0)

    # NCHW-shaped input consistent with the module's usage.
    x = jax.random.normal(key, (2, 4, 16, 16), dtype=jnp.float32)
    out = gelu_bert(x)
    jax.block_until_ready(out)
    assert out.shape == x.shape and out.dtype == x.dtype
    assert jnp.allclose(out, _gelu_bert_ref(x), atol=1e-5, rtol=1e-5)

    # bf16 path: exercises dtype-aware (16, 128) tile-row rounding.
    xb = jax.random.normal(jax.random.PRNGKey(1), (2, 8, 128), dtype=jnp.bfloat16)
    outb = gelu_bert(xb)
    jax.block_until_ready(outb)
    assert outb.dtype == xb.dtype
    assert jnp.allclose(outb.astype(jnp.float32),
                        _gelu_bert_ref(xb).astype(jnp.float32),
                        atol=2e-2, rtol=2e-2)

    # Ragged size: exercises the aligned-prefix + tiny-tail fallback path.
    x2 = jax.random.normal(jax.random.PRNGKey(2), (3, 5, 7, 11), dtype=jnp.float32)
    out2 = gelu_bert(x2)
    jax.block_until_ready(out2)
    assert jnp.allclose(out2, _gelu_bert_ref(x2), atol=1e-5, rtol=1e-5)

    print("KERNEL_OK")
</pallas_src>

<mosaic_0001>
module attributes {stable_mosaic.version = 11 : i64} {
  func.func @_gelu_bert_kernel(%arg0: i32, %arg1: memref<2x1024xf32, #tpu.memory_space<vmem>>, %arg2: memref<2x1024xf32, #tpu.memory_space<vmem>>) attributes {dimension_semantics = [#tpu.dimension_semantics<parallel>], iteration_bounds = array<i64: 1>, scalar_prefetch = 0 : i64, scratch_operands = 0 : i64, tpu.core_type = #tpu.core_type<tc>, window_params = [{transform_indices = @transform_0, window_bounds = array<i64: 2, 1024>}, {transform_indices = @transform_1, window_bounds = array<i64: 2, 1024>}]} {
    %c0 = arith.constant 0 : index
    %c0_0 = arith.constant 0 : index
    %0 = vector.load %arg1[%c0, %c0_0] : memref<2x1024xf32, #tpu.memory_space<vmem>>, vector<2x1024xf32>
    %cst = arith.constant 0.707106769 : f32
    %1 = vector.broadcast %cst : f32 to vector<2x1024xf32>
    %2 = arith.mulf %0, %1 : vector<2x1024xf32>
    %3 = math.erf %2 : vector<2x1024xf32>
    %cst_1 = arith.constant 5.000000e-01 : f32
    %4 = vector.broadcast %cst_1 : f32 to vector<2x1024xf32>
    %5 = arith.mulf %4, %3 : vector<2x1024xf32>
    %cst_2 = arith.constant 5.000000e-01 : f32
    %6 = vector.broadcast %cst_2 : f32 to vector<2x1024xf32>
    %7 = arith.addf %6, %5 : vector<2x1024xf32>
    %8 = arith.mulf %0, %7 : vector<2x1024xf32>
    %c0_3 = arith.constant 0 : index
    %c0_4 = arith.constant 0 : index
    %9 = vector.load %arg2[%c0_3, %c0_4] : memref<2x1024xf32, #tpu.memory_space<vmem>>, vector<2x1024xf32>
    tpu.vector_store %arg2[%c0_3, %c0_4], %8 {strides = array<i32>} : memref<2x1024xf32, #tpu.memory_space<vmem>>, vector<2x1024xf32>,
    return
  }
  func.func @transform_0(%arg0: i32) -> (i32, i32) {
    %c0_i32 = arith.constant 0 : i32
    %c0_i32_0 = arith.constant 0 : i32
    return %arg0, %c0_i32 : i32, i32
  }
  func.func @transform_1(%arg0: i32) -> (i32, i32) {
    %c0_i32 = arith.constant 0 : i32
    %c0_i32_0 = arith.constant 0 : i32
    return %arg0, %c0_i32 : i32, i32
  }
}

</mosaic_0001>

<bundles_post_ra>
// kernel: tpu_custom_call.1
= control target key start
LH: loop header
LB: loop body
LE: loop exit
PB: predicated region body
PF: predicated region fallthrough
CT: control target
= control target key end

     0   :  { %6 = vsyncpa [#allocation3], 0  ;;  %s140_s0 = inlined_call_operand.hbm [shape: f32[2,1024], index: 0, kind: input, shape index: {}]   ;;  %s141_s1 = inlined_call_operand.hbm [shape: f32[2,1024], index: 1, kind: output, shape index: {}]  }
   0x1   :  { %7 = vsyncpa [#allocation4], 0  ;;  %s104_s6 = smov [#allocation2]   ;;  %s56_s10 = scalar_lea.hbm %s140_s0, 256 }
   0x2   :  { %s14_s7 = sshll.u32 %s104_s6, 4  ;;  %p57_p0 = scmp.ne.s32.totalorder %s140_s0, %s56_s10  ;;  %s15_s7 = int_to_ptr.vmem [resolvable:$true] %s14_s7 }
   0x3   :  { %p60_p1 = scmp.lt.u32.totalorder %s56_s10, %s140_s0 }
   0x5   :  { %p62_p2 = pnand %p60_p1, %p57_p0 }
   0x7   :  { %65 = shalt.err (!%p62_p2)
}
   0x8   :  { %s66_s15 = scalar_lea.vmem %s15_s7, 256  ;;  %p71_p4 = scmp.lt.s32.totalorder %s15_s7, %s15_s7 }
   0x9   :  { %p67_p3 = scmp.ne.s32.totalorder %s15_s7, %s66_s15  ;;  %p72_p5 = scmp.lt.s32.totalorder %s66_s15, %s66_s15 }
   0xb   :  { %p73_p6 = por %p72_p5, %p71_p4 }
   0xd   :  { %p74_p7 = pnand %p73_p6, %p67_p3 }
   0xf   :  { %77 = shalt.err (!%p74_p7)
}
  0x10   :  { %17 = dma.hbm_to_vmem [thread:$0]  %s140_s0, 256, %s15_s7, [#allocation3]  }
  0x11   :  { %100 = dma.done.wait [#allocation3], 256  }
  0x12   :  { %101 = vsyncadd [#allocation3], 4294967040  ;;  %v21_v0 = vld [vmem:[#allocation2] sm:$0xff]  ;;  %v22_v1 = vld [vmem:[#allocation2 + $0x8] sm:$0xff]  ;;  %s105_s18 = smov [#allocation5]  }
  0x13   :  { %v23_v2 = vmul.f32 0.70710677, %v21_v0  ;;  %v24_v3 = vmul.f32 0.70710677, %v22_v1  ;;  %s41_s19 = sshll.u32 %s105_s18, 4  ;;  %s42_s19 = int_to_ptr.vmem [resolvable:$true] %s41_s19 }
  0x14   :  { %s78_s0 = scalar_lea.vmem %s42_s19, 256  ;;  %p83_p9 = scmp.lt.s32.totalorder %s42_s19, %s42_s19 }
  0x15   :  { %52 = verf.f32 %v23_v2  ;;  %p79_p8 = scmp.ne.s32.totalorder %s42_s19, %s78_s0  ;;  %p84_p10 = scmp.lt.s32.totalorder %s78_s0, %s78_s0 }
  0x16   :  { %54 = verf.f32 %v24_v3 }
  0x17   :  { %p85_p11 = por %p84_p10, %p83_p9 }
  0x19   :  { %p86_p12 = pnand %p85_p11, %p79_p8 }
  0x1f   :  { %v53_v4 = vpop.eup %52 }
  0x20   :  { %v55_v5 = vpop.eup %54  ;;  %v27_v6 = vmul.f32 0.5, %v53_v4 }
  0x21   :  { %v28_v7 = vmul.f32 0.5, %v55_v5 }
  0x22   :  { %v29_v8 = vadd.f32 0.5, %v27_v6 }
  0x23   :  { %v30_v9 = vadd.f32 0.5, %v28_v7 }
  0x24   :  { %v31_v10 = vmul.f32 %v29_v8, %v21_v0 }
  0x25   :  { %v32_v11 = vmul.f32 %v30_v9, %v22_v1 }
  0x26   :  { %33 = vst [vmem:[#allocation5] sm:$0xff] %v31_v10 }
  0x27   :  { %34 = vst [vmem:[#allocation5 + $0x8] sm:$0xff] %v32_v11 }
  0x28   :  { %89 = shalt.err (!%p86_p12)
}
  0x29   :  { %s90_s22 = scalar_lea.hbm %s141_s1, 256 }
  0x2a   :  { %p91_p13 = scmp.ne.s32.totalorder %s141_s1, %s90_s22  ;;  %p94_p0 = scmp.lt.u32.totalorder %s90_s22, %s141_s1 }
  0x2c   :  { %p96_p1 = pnand %p94_p0, %p91_p13 }
  0x2e   :  { %99 = shalt.err (!%p96_p1)
}
  0x2f   :  { %44 = dma.vmem_to_hbm [thread:$0]  %s42_s19, 256, %s141_s1, [#allocation4]  }
  0x30   :  { %102 = dma.done.wait [#allocation4], 256  }
  0x31   :  { %103 = vsyncadd [#allocation4], 4294967040 }
  0x32   :  { %48 = vsyncpa [#allocation3], 1 }
  0x33   :  { %49 = vsyncpa [#allocation4], 1 }

</bundles_post_ra>
